<compile_context>
chip_gen: v6e
topology: v6e:2x2x1
jax: 0.10.0
libtpu: 0.0.40
codegen_flags: <defaults>
</compile_context>

<pallas_src>
import jax
import jax.numpy as jnp
from jax.experimental import pallas as pl
from jax.experimental.pallas import tpu as pltpu

_LANE = 128
_VMEM_BUDGET = 56 * 1024 * 1024  # per-TensorCore budget; v7x-safe (64 MiB phys)


def _round_up(n, m):
    return ((n + m - 1) // m) * m


def _pad2(a, rows, cols):
    pr, pc = rows - a.shape[0], cols - a.shape[1]
    if pr or pc:
        a = jnp.pad(a, ((0, pr), (0, pc)))
    return a


def _make_fnn_kernel(compute_dtype):
    """compute_dtype: MXU operand dtype (f32 or bf16)."""

    def kernel(x_ref, w1_ref, b1_ref, w2_ref, b2_ref, w3_ref, b3_ref, out_ref):
        # x arrives in its HBM dtype; cast on the VPU (free under MXU slack)
        # instead of paying an extra f32->bf16 HBM pass in the wrapper.
        x = x_ref[...].astype(compute_dtype)

        # Layer 1: Linear + ReLU (f32 accumulation, f32 elementwise)
        h1 = jnp.dot(x, w1_ref[...], preferred_element_type=jnp.float32)
        h1 = jnp.maximum(h1 + b1_ref[...].astype(jnp.float32), 0.0)

        # Layer 2: Linear + ReLU
        h2 = jnp.dot(h1.astype(compute_dtype), w2_ref[...],
                     preferred_element_type=jnp.float32)
        h2 = jnp.maximum(h2 + b2_ref[...].astype(jnp.float32), 0.0)

        # Layer 3: Linear.  Padded-lane masking is folded into b3 on the host
        # (padded w3 columns are zero, padded b3 lanes are -1e30), so the
        # padded logits are exactly -1e30 and no in-kernel iota/where is needed.
        logits = jnp.dot(h2.astype(compute_dtype), w3_ref[...],
                         preferred_element_type=jnp.float32)
        logits = logits + b3_ref[...].astype(jnp.float32)

        # Numerically stable LogSoftmax along the last (lane) dim.
        m = jnp.max(logits, axis=-1, keepdims=True)
        shifted = logits - m
        lse = jnp.log(jnp.sum(jnp.exp(shifted), axis=-1, keepdims=True))
        out_ref[...] = (shifted - lse).astype(out_ref.dtype)

    return kernel


def fnn_forward(x, params, *, block_b=512, hidden_align=256, out_dtype=None):
    """x: [B, IN] float32.  params: (w1,b1,w2,b2,w3,b3) with weights [in,out]
    in float32 or bfloat16 (bf16 weights use the native bf16 MXU path with
    f32 accumulation)."""
    w1, b1, w2, b2, w3, b3 = params
    B, IN = x.shape
    H1, H2, O = w1.shape[1], w2.shape[1], w3.shape[1]
    assert w1.shape[0] == IN and w2.shape[0] == H1 and w3.shape[0] == H2

    compute_dtype = w1.dtype                    # f32 or bf16 on the MXU
    out_dtype = x.dtype if out_dtype is None else out_dtype

    # Feature padding: lane-dense (128) input/output; hidden dims padded to the
    # v6e/v7x MXU tile (256) so contraction/output dims fill full MXU passes.
    in_p = _round_up(IN, _LANE)
    o_p = _round_up(O, _LANE)
    h1_p = _round_up(H1, max(hidden_align, _LANE))
    h2_p = _round_up(H2, max(hidden_align, _LANE))

    # dtype-aware sublane packing granularity for the batch tile.
    wb = jnp.dtype(compute_dtype).itemsize
    xb = jnp.dtype(x.dtype).itemsize
    ob = jnp.dtype(out_dtype).itemsize
    gran = {4: 8, 2: 16, 1: 32}.get(wb, 8)

    # Resident (single-buffered) weights + biases.
    weight_bytes = (in_p * h1_p + h1_p * h2_p + h2_p * o_p
                    + h1_p + h2_p + o_p) * wb

    def vmem_bytes(tb):
        x_buf = 2 * tb * in_p * xb               # double-buffered x stream
        out_buf = 2 * tb * o_p * ob              # double-buffered out stream
        # f32 intermediates + compute-dtype casts staged in VMEM per tile.
        interm = tb * (in_p * wb + (h1_p + h2_p) * (4 + wb) + 3 * o_p * 4)
        return weight_bytes + x_buf + out_buf + interm

    # Batch tile: largest granularity-multiple up to block_b that fits the
    # per-TensorCore VMEM budget; pad batch to a multiple of the tile.
    tb = min(_round_up(block_b, gran), _round_up(B, gran))
    while tb > gran and vmem_bytes(tb) > _VMEM_BUDGET:
        tb = max(gran, _round_up(tb // 2, gran))
    # TODO(synk): if weight_bytes alone exceeds the budget (very large hidden
    # widths on v7x), stream w2/w3 with a nested pltpu.emit_pipeline over the
    # hidden dim instead of holding them resident.

    b_p = _round_up(B, tb)

    x_p = _pad2(x, b_p, in_p)                    # no cast: kernel casts on VPU
    w1_p, b1_p = _pad2(w1, in_p, h1_p), _pad2(b1, 1, h1_p)
    w2_p, b2_p = _pad2(w2, h1_p, h2_p), _pad2(b2, 1, h2_p)
    w3_p, b3_p = _pad2(w3, h2_p, o_p), _pad2(b3, 1, o_p)
    if o_p > O:
        # Fold the padded-logit mask into b3 (bf16(-1e30) ~ -1.0e30, fine).
        b3_p = b3_p.at[:, O:].set(jnp.asarray(-1e30, dtype=b3_p.dtype))

    grid = (b_p // tb,)

    vmem_limit = int(min(max(vmem_bytes(tb) * 1.25 + (2 << 20), 32 << 20),
                         100 << 20))

    cost = pl.CostEstimate(
        flops=2 * b_p * (in_p * h1_p + h1_p * h2_p + h2_p * o_p),
        transcendentals=b_p * (o_p + 1),
        bytes_accessed=int(x_p.size) * xb + weight_bytes + b_p * o_p * ob,
    )

    def resident(shape, single_buffer):
        if single_buffer:
            return pl.BlockSpec(shape, lambda i: (0, 0),
                                pipeline_mode=pl.Buffered(1))
        return pl.BlockSpec(shape, lambda i: (0, 0))

    def run(single_buffer_weights):
        return pl.pallas_call(
            _make_fnn_kernel(compute_dtype),
            out_shape=jax.ShapeDtypeStruct((b_p, o_p), out_dtype),
            grid=grid,
            in_specs=[
                pl.BlockSpec((tb, in_p), lambda i: (i, 0)),   # x: streamed
                resident((in_p, h1_p), single_buffer_weights),  # w1
                resident((1, h1_p), single_buffer_weights),     # b1
                resident((h1_p, h2_p), single_buffer_weights),  # w2
                resident((1, h2_p), single_buffer_weights),     # b2
                resident((h2_p, o_p), single_buffer_weights),   # w3
                resident((1, o_p), single_buffer_weights),      # b3
            ],
            out_specs=pl.BlockSpec((tb, o_p), lambda i: (i, 0)),
            compiler_params=pltpu.CompilerParams(
                # megacore sharding on v7x; harmless no-op on v5e/v6e (1 TC)
                dimension_semantics=("parallel",),
                vmem_limit_bytes=vmem_limit,
            ),
            cost_estimate=cost,
        )(x_p, w1_p, b1_p, w2_p, b2_p, w3_p, b3_p)

    try:
        out_p = run(single_buffer_weights=True)
    except Exception:
        # pipeline_mode=pl.Buffered(1) unsupported on this jax build: fall back
        # to default double-buffered resident weights (same semantics).
        out_p = run(single_buffer_weights=False)

    return out_p[:B, :O]


def init_params(key, input_size, n_hidden, output_size, dtype=jnp.float32):
    # Deterministic init mimicking PyTorch nn.Linear's U(-1/sqrt(fan_in), ...).
    # Weights stored as [in, out] (transpose of torch layout).
    ks = jax.random.split(key, 6)

    def lin(kw, kb, fan_in, fan_out):
        bound = 1.0 / jnp.sqrt(fan_in)
        w = jax.random.uniform(kw, (fan_in, fan_out), jnp.float32, -bound, bound)
        b = jax.random.uniform(kb, (1, fan_out), jnp.float32, -bound, bound)
        return w.astype(dtype), b.astype(dtype)

    w1, b1 = lin(ks[0], ks[1], input_size, n_hidden)
    w2, b2 = lin(ks[2], ks[3], n_hidden, n_hidden)
    w3, b3 = lin(ks[4], ks[5], n_hidden, output_size)
    return (w1, b1, w2, b2, w3, b3)


def reference_forward(x, params):
    # Mirrors the kernel's dtype policy: MXU operands in the weight dtype,
    # f32 accumulation, f32 bias/ReLU/log-softmax.
    w1, b1, w2, b2, w3, b3 = params
    cdt = w1.dtype
    h1 = jnp.maximum(
        jnp.dot(x.astype(cdt), w1, preferred_element_type=jnp.float32)
        + b1.astype(jnp.float32), 0.0)
    h2 = jnp.maximum(
        jnp.dot(h1.astype(cdt), w2, preferred_element_type=jnp.float32)
        + b2.astype(jnp.float32), 0.0)
    logits = (jnp.dot(h2.astype(cdt), w3, preferred_element_type=jnp.float32)
              + b3.astype(jnp.float32))
    return jax.nn.log_softmax(logits, axis=1)


if __name__ == "__main__":
    key = jax.random.PRNGKey(0)
    k_x, k_p = jax.random.split(key)

    batch, input_size, n_hidden, output_size = 8, 32, 32, 16
    x = jax.random.normal(k_x, (batch, input_size), dtype=jnp.float32)

    # float32 weights: tight correctness check against the reference.
    params = init_params(k_p, input_size, n_hidden, output_size)
    out = jax.block_until_ready(fnn_forward(x, params))
    ref = reference_forward(x, params)
    assert out.shape == (batch, output_size)
    assert jnp.allclose(out, ref, atol=1e-5, rtol=1e-5)

    # bfloat16 weights (v6e/v7x MXU path, f32 accumulation): looser check.
    params_bf16 = jax.tree_util.tree_map(
        lambda a: a.astype(jnp.bfloat16), params)
    out_bf = jax.block_until_ready(fnn_forward(x, params_bf16))
    ref_bf = reference_forward(x, params_bf16)
    assert out_bf.shape == (batch, output_size)
    assert jnp.allclose(out_bf, ref_bf, atol=2e-2, rtol=2e-2)

    print("KERNEL_OK")
</pallas_src>

<mosaic_0001>
module attributes {stable_mosaic.version = 11 : i64} {
  func.func @kernel(%arg0: i32, %arg1: memref<8x128xf32, #tpu.memory_space<vmem>>, %arg2: memref<128x256xf32, #tpu.memory_space<vmem>>, %arg3: memref<1x256xf32, #tpu.memory_space<vmem>>, %arg4: memref<256x256xf32, #tpu.memory_space<vmem>>, %arg5: memref<1x256xf32, #tpu.memory_space<vmem>>, %arg6: memref<256x128xf32, #tpu.memory_space<vmem>>, %arg7: memref<1x128xf32, #tpu.memory_space<vmem>>, %arg8: memref<8x128xf32, #tpu.memory_space<vmem>>) attributes {dimension_semantics = [#tpu.dimension_semantics<parallel>], iteration_bounds = array<i64: 1>, scalar_prefetch = 0 : i64, scratch_operands = 0 : i64, tpu.core_type = #tpu.core_type<tc>, window_params = [{transform_indices = @transform_0, window_bounds = array<i64: 8, 128>}, {pipeline_mode = #tpu.pipeline_mode<synchronous>, transform_indices = @transform_1, window_bounds = array<i64: 128, 256>}, {pipeline_mode = #tpu.pipeline_mode<synchronous>, transform_indices = @transform_2, window_bounds = array<i64: 1, 256>}, {pipeline_mode = #tpu.pipeline_mode<synchronous>, transform_indices = @transform_3, window_bounds = array<i64: 256, 256>}, {pipeline_mode = #tpu.pipeline_mode<synchronous>, transform_indices = @transform_4, window_bounds = array<i64: 1, 256>}, {pipeline_mode = #tpu.pipeline_mode<synchronous>, transform_indices = @transform_5, window_bounds = array<i64: 256, 128>}, {pipeline_mode = #tpu.pipeline_mode<synchronous>, transform_indices = @transform_6, window_bounds = array<i64: 1, 128>}, {transform_indices = @transform_7, window_bounds = array<i64: 8, 128>}]} {
    %c0 = arith.constant 0 : index
    %c0_0 = arith.constant 0 : index
    %0 = vector.load %arg1[%c0, %c0_0] : memref<8x128xf32, #tpu.memory_space<vmem>>, vector<8x128xf32>
    %c0_1 = arith.constant 0 : index
    %c0_2 = arith.constant 0 : index
    %1 = vector.load %arg2[%c0_1, %c0_2] : memref<128x256xf32, #tpu.memory_space<vmem>>, vector<128x256xf32>
    %cst = arith.constant dense<0.000000e+00> : vector<8x256xf32>
    %2 = tpu.matmul %0, %1, %cst {dimension_numbers = #tpu.dot_dimension_numbers<[1], [0], [0], [1], [0, 0, 1, 1], [], []>} : vector<8x128xf32>, vector<128x256xf32>, vector<8x256xf32> -> vector<8x256xf32>
    %c0_3 = arith.constant 0 : index
    %c0_4 = arith.constant 0 : index
    %3 = vector.load %arg3[%c0_3, %c0_4] : memref<1x256xf32, #tpu.memory_space<vmem>>, vector<1x256xf32>
    %4 = vector.broadcast %3 : vector<1x256xf32> to vector<8x256xf32>
    %5 = arith.addf %2, %4 : vector<8x256xf32>
    %cst_5 = arith.constant 0.000000e+00 : f32
    %6 = vector.broadcast %cst_5 : f32 to vector<8x256xf32>
    %7 = arith.maximumf %5, %6 : vector<8x256xf32>
    %c0_6 = arith.constant 0 : index
    %c0_7 = arith.constant 0 : index
    %8 = vector.load %arg4[%c0_6, %c0_7] : memref<256x256xf32, #tpu.memory_space<vmem>>, vector<256x256xf32>
    %cst_8 = arith.constant dense<0.000000e+00> : vector<8x256xf32>
    %9 = tpu.matmul %7, %8, %cst_8 {dimension_numbers = #tpu.dot_dimension_numbers<[1], [0], [0], [1], [0, 0, 1, 1], [], []>} : vector<8x256xf32>, vector<256x256xf32>, vector<8x256xf32> -> vector<8x256xf32>
    %c0_9 = arith.constant 0 : index
    %c0_10 = arith.constant 0 : index
    %10 = vector.load %arg5[%c0_9, %c0_10] : memref<1x256xf32, #tpu.memory_space<vmem>>, vector<1x256xf32>
    %11 = vector.broadcast %10 : vector<1x256xf32> to vector<8x256xf32>
    %12 = arith.addf %9, %11 : vector<8x256xf32>
    %cst_11 = arith.constant 0.000000e+00 : f32
    %13 = vector.broadcast %cst_11 : f32 to vector<8x256xf32>
    %14 = arith.maximumf %12, %13 : vector<8x256xf32>
    %c0_12 = arith.constant 0 : index
    %c0_13 = arith.constant 0 : index
    %15 = vector.load %arg6[%c0_12, %c0_13] : memref<256x128xf32, #tpu.memory_space<vmem>>, vector<256x128xf32>
    %cst_14 = arith.constant dense<0.000000e+00> : vector<8x128xf32>
    %16 = tpu.matmul %14, %15, %cst_14 {dimension_numbers = #tpu.dot_dimension_numbers<[1], [0], [0], [1], [0, 0, 1, 1], [], []>} : vector<8x256xf32>, vector<256x128xf32>, vector<8x128xf32> -> vector<8x128xf32>
    %c0_15 = arith.constant 0 : index
    %c0_16 = arith.constant 0 : index
    %17 = vector.load %arg7[%c0_15, %c0_16] : memref<1x128xf32, #tpu.memory_space<vmem>>, vector<1x128xf32>
    %18 = vector.broadcast %17 : vector<1x128xf32> to vector<8x128xf32>
    %19 = arith.addf %16, %18 : vector<8x128xf32>
    %cst_17 = arith.constant dense<0xFF800000> : vector<8xf32>
    %20 = vector.multi_reduction <maximumf>, %19, %cst_17 [1] : vector<8x128xf32> to vector<8xf32>
    %21 = vector.shape_cast %20 : vector<8xf32> to vector<8x1xf32>
    %22 = vector.broadcast %21 : vector<8x1xf32> to vector<8x128xf32>
    %23 = arith.subf %19, %22 : vector<8x128xf32>
    %24 = math.exp %23 : vector<8x128xf32>
    %cst_18 = arith.constant dense<0.000000e+00> : vector<8xf32>
    %25 = vector.multi_reduction <add>, %24, %cst_18 [1] : vector<8x128xf32> to vector<8xf32>
    %26 = vector.shape_cast %25 : vector<8xf32> to vector<8x1xf32>
    %27 = math.log %26 : vector<8x1xf32>
    %28 = vector.broadcast %27 : vector<8x1xf32> to vector<8x128xf32>
    %29 = arith.subf %23, %28 : vector<8x128xf32>
    %c0_19 = arith.constant 0 : index
    %c0_20 = arith.constant 0 : index
    %30 = vector.load %arg8[%c0_19, %c0_20] : memref<8x128xf32, #tpu.memory_space<vmem>>, vector<8x128xf32>
    tpu.vector_store %arg8[%c0_19, %c0_20], %29 {strides = array<i32>} : memref<8x128xf32, #tpu.memory_space<vmem>>, vector<8x128xf32>,
    return
  }
  func.func @transform_0(%arg0: i32) -> (i32, i32) {
    %c0_i32 = arith.constant 0 : i32
    %c0_i32_0 = arith.constant 0 : i32
    return %arg0, %c0_i32 : i32, i32
  }
  func.func @transform_1(%arg0: i32) -> (i32, i32) {
    %c0_i32 = arith.constant 0 : i32
    %c0_i32_0 = arith.constant 0 : i32
    %c0_i32_1 = arith.constant 0 : i32
    return %c0_i32, %c0_i32_0 : i32, i32
  }
  func.func @transform_2(%arg0: i32) -> (i32, i32) {
    %c0_i32 = arith.constant 0 : i32
    %c0_i32_0 = arith.constant 0 : i32
    %c0_i32_1 = arith.constant 0 : i32
    return %c0_i32, %c0_i32_0 : i32, i32
  }
  func.func @transform_3(%arg0: i32) -> (i32, i32) {
    %c0_i32 = arith.constant 0 : i32
    %c0_i32_0 = arith.constant 0 : i32
    %c0_i32_1 = arith.constant 0 : i32
    return %c0_i32, %c0_i32_0 : i32, i32
  }
  func.func @transform_4(%arg0: i32) -> (i32, i32) {
    %c0_i32 = arith.constant 0 : i32
    %c0_i32_0 = arith.constant 0 : i32
    %c0_i32_1 = arith.constant 0 : i32
    return %c0_i32, %c0_i32_0 : i32, i32
  }
  func.func @transform_5(%arg0: i32) -> (i32, i32) {
    %c0_i32 = arith.constant 0 : i32
    %c0_i32_0 = arith.constant 0 : i32
    %c0_i32_1 = arith.constant 0 : i32
    return %c0_i32, %c0_i32_0 : i32, i32
  }
  func.func @transform_6(%arg0: i32) -> (i32, i32) {
    %c0_i32 = arith.constant 0 : i32
    %c0_i32_0 = arith.constant 0 : i32
    %c0_i32_1 = arith.constant 0 : i32
    return %c0_i32, %c0_i32_0 : i32, i32
  }
  func.func @transform_7(%arg0: i32) -> (i32, i32) {
    %c0_i32 = arith.constant 0 : i32
    %c0_i32_0 = arith.constant 0 : i32
    return %arg0, %c0_i32 : i32, i32
  }
}

module attributes {stable_mosaic.version = 11 : i64} {
  func.func @kernel(%arg0: i32, %arg1: memref<8x128xf32, #tpu.memory_space<vmem>>, %arg2: memref<128x256xf32, #tpu.memory_space<vmem>>, %arg3: memref<1x256xf32, #tpu.memory_space<vmem>>, %arg4: memref<256x256xf32, #tpu.memory_space<vmem>>, %arg5: memref<1x256xf32, #tpu.memory_space<vmem>>, %arg6: memref<256x128xf32, #tpu.memory_space<vmem>>, %arg7: memref<1x128xf32, #tpu.memory_space<vmem>>, %arg8: memref<8x128xf32, #tpu.memory_space<vmem>>) attributes {dimension_semantics = [#tpu.dimension_semantics<parallel>], iteration_bounds = array<i64: 1>, scalar_prefetch = 0 : i64, scratch_operands = 0 : i64, tpu.core_type = #tpu.core_type<tc>, window_params = [{transform_indices = @transform_0, window_bounds = array<i64: 8, 128>}, {pipeline_mode = #tpu.pipeline_mode<synchronous>, transform_indices = @transform_1, window_bounds = array<i64: 128, 256>}, {pipeline_mode = #tpu.pipeline_mode<synchronous>, transform_indices = @transform_2, window_bounds = array<i64: 1, 256>}, {pipeline_mode = #tpu.pipeline_mode<synchronous>, transform_indices = @transform_3, window_bounds = array<i64: 256, 256>}, {pipeline_mode = #tpu.pipeline_mode<synchronous>, transform_indices = @transform_4, window_bounds = array<i64: 1, 256>}, {pipeline_mode = #tpu.pipeline_mode<synchronous>, transform_indices = @transform_5, window_bounds = array<i64: 256, 128>}, {pipeline_mode = #tpu.pipeline_mode<synchronous>, transform_indices = @transform_6, window_bounds = array<i64: 1, 128>}, {transform_indices = @transform_7, window_bounds = array<i64: 8, 128>}]} {
    %c0 = arith.constant 0 : index
    %c0_0 = arith.constant 0 : index
    %0 = vector.load %arg1[%c0, %c0_0] : memref<8x128xf32, #tpu.memory_space<vmem>>, vector<8x128xf32>
    %c0_1 = arith.constant 0 : index
    %c0_2 = arith.constant 0 : index
    %1 = vector.load %arg2[%c0_1, %c0_2] : memref<128x256xf32, #tpu.memory_space<vmem>>, vector<128x256xf32>
    %cst = arith.constant dense<0.000000e+00> : vector<8x256xf32>
    %2 = tpu.matmul %0, %1, %cst {dimension_numbers = #tpu.dot_dimension_numbers<[1], [0], [0], [1], [0, 0, 1, 1], [], []>} : vector<8x128xf32>, vector<128x256xf32>, vector<8x256xf32> -> vector<8x256xf32>
    %c0_3 = arith.constant 0 : index
    %c0_4 = arith.constant 0 : index
    %3 = vector.load %arg3[%c0_3, %c0_4] : memref<1x256xf32, #tpu.memory_space<vmem>>, vector<1x256xf32>
    %4 = vector.broadcast %3 : vector<1x256xf32> to vector<8x256xf32>
    %5 = arith.addf %2, %4 : vector<8x256xf32>
    %cst_5 = arith.constant 0.000000e+00 : f32
    %6 = vector.broadcast %cst_5 : f32 to vector<8x256xf32>
    %7 = arith.maximumf %5, %6 : vector<8x256xf32>
    %c0_6 = arith.constant 0 : index
    %c0_7 = arith.constant 0 : index
    %8 = vector.load %arg4[%c0_6, %c0_7] : memref<256x256xf32, #tpu.memory_space<vmem>>, vector<256x256xf32>
    %cst_8 = arith.constant dense<0.000000e+00> : vector<8x256xf32>
    %9 = tpu.matmul %7, %8, %cst_8 {dimension_numbers = #tpu.dot_dimension_numbers<[1], [0], [0], [1], [0, 0, 1, 1], [], []>} : vector<8x256xf32>, vector<256x256xf32>, vector<8x256xf32> -> vector<8x256xf32>
    %c0_9 = arith.constant 0 : index
    %c0_10 = arith.constant 0 : index
    %10 = vector.load %arg5[%c0_9, %c0_10] : memref<1x256xf32, #tpu.memory_space<vmem>>, vector<1x256xf32>
    %11 = vector.broadcast %10 : vector<1x256xf32> to vector<8x256xf32>
    %12 = arith.addf %9, %11 : vector<8x256xf32>
    %cst_11 = arith.constant 0.000000e+00 : f32
    %13 = vector.broadcast %cst_11 : f32 to vector<8x256xf32>
    %14 = arith.maximumf %12, %13 : vector<8x256xf32>
    %c0_12 = arith.constant 0 : index
    %c0_13 = arith.constant 0 : index
    %15 = vector.load %arg6[%c0_12, %c0_13] : memref<256x128xf32, #tpu.memory_space<vmem>>, vector<256x128xf32>
    %cst_14 = arith.constant dense<0.000000e+00> : vector<8x128xf32>
    %16 = tpu.matmul %14, %15, %cst_14 {dimension_numbers = #tpu.dot_dimension_numbers<[1], [0], [0], [1], [0, 0, 1, 1], [], []>} : vector<8x256xf32>, vector<256x128xf32>, vector<8x128xf32> -> vector<8x128xf32>
    %c0_15 = arith.constant 0 : index
    %c0_16 = arith.constant 0 : index
    %17 = vector.load %arg7[%c0_15, %c0_16] : memref<1x128xf32, #tpu.memory_space<vmem>>, vector<1x128xf32>
    %18 = vector.broadcast %17 : vector<1x128xf32> to vector<8x128xf32>
    %19 = arith.addf %16, %18 : vector<8x128xf32>
    %cst_17 = arith.constant dense<0xFF800000> : vector<8xf32>
    %20 = vector.multi_reduction <maximumf>, %19, %cst_17 [1] : vector<8x128xf32> to vector<8xf32>
    %21 = vector.shape_cast %20 : vector<8xf32> to vector<8x1xf32>
    %22 = vector.broadcast %21 : vector<8x1xf32> to vector<8x128xf32>
    %23 = arith.subf %19, %22 : vector<8x128xf32>
    %24 = math.exp %23 : vector<8x128xf32>
    %cst_18 = arith.constant dense<0.000000e+00> : vector<8xf32>
    %25 = vector.multi_reduction <add>, %24, %cst_18 [1] : vector<8x128xf32> to vector<8xf32>
    %26 = vector.shape_cast %25 : vector<8xf32> to vector<8x1xf32>
    %27 = math.log %26 : vector<8x1xf32>
    %28 = vector.broadcast %27 : vector<8x1xf32> to vector<8x128xf32>
    %29 = arith.subf %23, %28 : vector<8x128xf32>
    %c0_19 = arith.constant 0 : index
    %c0_20 = arith.constant 0 : index
    %30 = vector.load %arg8[%c0_19, %c0_20] : memref<8x128xf32, #tpu.memory_space<vmem>>, vector<8x128xf32>
    tpu.vector_store %arg8[%c0_19, %c0_20], %29 {strides = array<i32>} : memref<8x128xf32, #tpu.memory_space<vmem>>, vector<8x128xf32>,
    return
  }
  func.func @transform_0(%arg0: i32) -> (i32, i32) {
    %c0_i32 = arith.constant 0 : i32
    %c0_i32_0 = arith.constant 0 : i32
    return %arg0, %c0_i32 : i32, i32
  }
  func.func @transform_1(%arg0: i32) -> (i32, i32) {
    %c0_i32 = arith.constant 0 : i32
    %c0_i32_0 = arith.constant 0 : i32
    %c0_i32_1 = arith.constant 0 : i32
    return %c0_i32, %c0_i32_0 : i32, i32
  }
  func.func @transform_2(%arg0: i32) -> (i32, i32) {
    %c0_i32 = arith.constant 0 : i32
    %c0_i32_0 = arith.constant 0 : i32
    %c0_i32_1 = arith.constant 0 : i32
    return %c0_i32, %c0_i32_0 : i32, i32
  }
  func.func @transform_3(%arg0: i32) -> (i32, i32) {
    %c0_i32 = arith.constant 0 : i32
    %c0_i32_0 = arith.constant 0 : i32
    %c0_i32_1 = arith.constant 0 : i32
    return %c0_i32, %c0_i32_0 : i32, i32
  }
  func.func @transform_4(%arg0: i32) -> (i32, i32) {
    %c0_i32 = arith.constant 0 : i32
    %c0_i32_0 = arith.constant 0 : i32
    %c0_i32_1 = arith.constant 0 : i32
    return %c0_i32, %c0_i32_0 : i32, i32
  }
  func.func @transform_5(%arg0: i32) -> (i32, i32) {
    %c0_i32 = arith.constant 0 : i32
    %c0_i32_0 = arith.constant 0 : i32
    %c0_i32_1 = arith.constant 0 : i32
    return %c0_i32, %c0_i32_0 : i32, i32
  }
  func.func @transform_6(%arg0: i32) -> (i32, i32) {
    %c0_i32 = arith.constant 0 : i32
    %c0_i32_0 = arith.constant 0 : i32
    %c0_i32_1 = arith.constant 0 : i32
    return %c0_i32, %c0_i32_0 : i32, i32
  }
  func.func @transform_7(%arg0: i32) -> (i32, i32) {
    %c0_i32 = arith.constant 0 : i32
    %c0_i32_0 = arith.constant 0 : i32
    return %arg0, %c0_i32 : i32, i32
  }
}

</mosaic_0001>

<bundles_post_ra>
// kernel: tpu_custom_call.1
= control target key start
LH: loop header
LB: loop body
LE: loop exit
PB: predicated region body
PF: predicated region fallthrough
CT: control target
= control target key end

     0   :  { %12 = vsyncpa [#allocation3], 0  ;;  %s716_s0 = inlined_call_operand.hbm [shape: f32[8,128], index: 0, kind: input, shape index: {}]   ;;  %s717_s1 = inlined_call_operand.hbm [shape: f32[128,256], index: 1, kind: input, shape index: {}]   ;;  %s718_s2 = inlined_call_operand.vmem [shape: f32[1,256], index: 2, kind: input, shape index: {}]   ;;  %s719_s3 = inlined_call_operand.hbm [shape: f32[256,256], index: 3, kind: input, shape index: {}]   ;;  %s720_s4 = inlined_call_operand.vmem [shape: f32[1,256], index: 4, kind: input, shape index: {}]   ;;  %s721_s5 = inlined_call_operand.hbm [shape: f32[256,128], index: 5, kind: input, shape index: {}]   ;;  %s722_s6 = inlined_call_operand.vmem [shape: f32[1,128], index: 6, kind: input, shape index: {}]   ;;  %s723_s7 = inlined_call_operand.hbm [shape: f32[8,128], index: 7, kind: output, shape index: {}]  }
   0x1   :  { %13 = vsyncpa [#allocation6], 0 }
   0x2   :  { %14 = vsyncpa [#allocation9], 0 }
   0x3   :  { %15 = vsyncpa [#allocation4], 0  ;;  %s642_s24 = smov [#allocation5]  }
   0x4   :  { %s31_s25 = sshll.u32 %s642_s24, 4  ;;  %s32_s25 = int_to_ptr.vmem [resolvable:$true] %s31_s25 }
   0x5   :  { %s542_s26 = scalar_lea.vmem %s32_s25, 4096  ;;  %p547_p1 = scmp.lt.s32.totalorder %s32_s25, %s32_s25 }
   0x6   :  { %p543_p0 = scmp.ne.s32.totalorder %s32_s25, %s542_s26  ;;  %p548_p2 = scmp.lt.s32.totalorder %s542_s26, %s542_s26 }
   0x8   :  { %p549_p3 = por %p548_p2, %p547_p1 }
   0xa   :  { %p550_p4 = pnand %p549_p3, %p543_p0 }
   0xc   :  { %553 = shalt.err (!%p550_p4)
}
   0xd   :  { %s643_s27 = smov 256   ;;  %s644_s28 = smov 16  }
   0xe   :  { %37 = dma.hbm_to_vmem [thread:$0]  %s717_s1, 4096, %s32_s25, [#allocation6], %s643_s27, %s643_s27, %s644_s28  }
   0xf   :  { %s645_s8 = smov [#allocation2]   ;;  %s646_s10 = smov [#allocation7]  }
  0x10   :  { %s22_s9 = sshll.u32 %s645_s8, 4  ;;  %s45_s11 = sshll.u32 %s646_s10, 4  ;;  %s23_s9 = int_to_ptr.vmem [resolvable:$true] %s22_s9  ;;  %s46_s11 = int_to_ptr.vmem [resolvable:$true] %s45_s11 }
  0x11   :  { %s562_s12 = scalar_lea.vmem %s23_s9, 128  ;;  %p567_p6 = scmp.lt.s32.totalorder %s23_s9, %s23_s9 }
  0x12   :  { %p563_p5 = scmp.ne.s32.totalorder %s23_s9, %s562_s12  ;;  %p568_p7 = scmp.lt.s32.totalorder %s562_s12, %s562_s12 }
  0x14   :  { %p569_p8 = por %p568_p7, %p567_p6 }
  0x16   :  { %p570_p9 = pnand %p569_p8, %p563_p5 }
  0x18   :  { %573 = shalt.err (!%p570_p9)
}
  0x19   :  { %25 = dma.hbm_to_vmem [thread:$0]  %s716_s0, 128, %s23_s9, [#allocation3]  }
  0x1a   :  { %s582_s15 = scalar_lea.vmem %s46_s11, 8192  ;;  %p587_p11 = scmp.lt.s32.totalorder %s46_s11, %s46_s11 }
  0x1b   :  { %p583_p10 = scmp.ne.s32.totalorder %s46_s11, %s582_s15  ;;  %p588_p12 = scmp.lt.s32.totalorder %s582_s15, %s582_s15 }
  0x1d   :  { %p589_p13 = por %p588_p12, %p587_p11 }
  0x1f   :  { %p590_p0 = pnand %p589_p13, %p583_p10 }
  0x21   :  { %593 = shalt.err (!%p590_p0)
}
  0x22   :  { %51 = dma.hbm_to_vmem [thread:$0]  %s719_s3, 8192, %s46_s11, [#allocation6], %s643_s27, %s643_s27, %s644_s28  }
  0x23   :  { %s647_s17 = smov [#allocation8]  }
  0x24   :  { %s59_s18 = sshll.u32 %s647_s17, 4  ;;  %s60_s18 = int_to_ptr.vmem [resolvable:$true] %s59_s18 }
  0x25   :  { %s602_s19 = scalar_lea.vmem %s60_s18, 4096  ;;  %p607_p2 = scmp.lt.s32.totalorder %s60_s18, %s60_s18 }
  0x26   :  { %p603_p1 = scmp.ne.s32.totalorder %s60_s18, %s602_s19  ;;  %p608_p3 = scmp.lt.s32.totalorder %s602_s19, %s602_s19 }
  0x28   :  { %p609_p4 = por %p608_p3, %p607_p2 }
  0x2a   :  { %p610_p5 = pnand %p609_p4, %p603_p1 }
  0x2c   :  { %613 = shalt.err (!%p610_p5)
}
  0x2d   :  { %s648_s0 = smov 128   ;;  %s649_s20 = smov 8  }
  0x2e   :  { %65 = dma.hbm_to_vmem [thread:$0]  %s721_s5, 4096, %s60_s18, [#allocation9], %s648_s0, %s648_s0, %s649_s20  }
  0x2f   :  { %634 = dma.done.wait [#allocation3], 128  }
  0x30   :  { %635 = vsyncadd [#allocation3], 4294967168 }
  0x31   :  { %636 = dma.done.wait [#allocation6], 12288  }
  0x32   :  { %637 = vsyncadd [#allocation6], 4294955008 }
  0x33   :  { %638 = dma.done.wait [#allocation9], 4096  }
  0x34   :  { %639 = vsyncadd [#allocation9], 4294963200  ;;  %v650_v0 = vmov 0.0   ;;  %v112_v1 = vld [vmem:[#allocation5 + $0xf8] sm:$0xff]  ;;  %v111_v2 = vld [vmem:[#allocation5 + $0xf0] sm:$0xff] }
  0x35   :  { %189 = vmatprep.mubr.f32.mxu0 %v650_v0  ;;  %v110_v3 = vld [vmem:[#allocation5 + $0xe8] sm:$0xff]  ;;  %125 = vmatprep.subr.mxu0 %v112_v1  ;;  %v109_v4 = vld [vmem:[#allocation5 + $0xe0] sm:$0xff]  ;;  %v108_v5 = vld [vmem:[#allocation5 + $0xd8] sm:$0xff] }
  0x36   :  { %126 = vmatpush1.msra.mxu0 %v111_v2  ;;  %v107_v6 = vld [vmem:[#allocation5 + $0xd0] sm:$0xff]  ;;  %v106_v7 = vld [vmem:[#allocation5 + $0xc8] sm:$0xff]  ;;  %v105_v8 = vld [vmem:[#allocation5 + $0xc0] sm:$0xff] }
  0x37   :  { %127 = vmatprep.subr.mxu0 %v110_v3  ;;  %v104_v9 = vld [vmem:[#allocation5 + $0xb8] sm:$0xff]  ;;  %v103_v10 = vld [vmem:[#allocation5 + $0xb0] sm:$0xff]  ;;  %v102_v11 = vld [vmem:[#allocation5 + $0xa8] sm:$0xff] }
  0x38   :  { %128 = vmatpush1.msra.mxu0 %v109_v4  ;;  %v101_v12 = vld [vmem:[#allocation5 + $0xa0] sm:$0xff]  ;;  %v100_v13 = vld [vmem:[#allocation5 + $0x98] sm:$0xff]  ;;  %v99_v14 = vld [vmem:[#allocation5 + $0x90] sm:$0xff] }
  0x39   :  { %129 = vmatprep.subr.mxu0 %v108_v5  ;;  %v229_v15 = vld [vmem:[#allocation7 + $0xf8] sm:$0xff]  ;;  %v228_v16 = vld [vmem:[#allocation7 + $0xf0] sm:$0xff]  ;;  %v227_v17 = vld [vmem:[#allocation7 + $0xe8] sm:$0xff] }
  0x3a   :  { %130 = vmatpush1.msra.mxu0 %v107_v6  ;;  %v98_v18 = vld [vmem:[#allocation5 + $0x88] sm:$0xff]  ;;  %274 = vmatprep.subr.mxu1 %v229_v15  ;;  %v226_v19 = vld [vmem:[#allocation7 + $0xe0] sm:$0xff]  ;;  %v225_v21 = vld [vmem:[#allocation7 + $0xd8] sm:$0xff] }
  0x3b   :  { %131 = vmatprep.subr.mxu0 %v106_v7  ;;  %v97_v20 = vld [vmem:[#allocation5 + $0x80] sm:$0xff]  ;;  %275 = vmatpush1.msra.mxu1 %v228_v16  ;;  %v96_v22 = vld [vmem:[#allocation5 + $0x78] sm:$0xff]  ;;  %v224_v23 = vld [vmem:[#allocation7 + $0xd0] sm:$0xff] }
  0x3c   :  { %132 = vmatpush1.msra.mxu0 %v105_v8  ;;  %276 = vmatprep.subr.mxu1 %v227_v17  ;;  %v95_v24 = vld [vmem:[#allocation5 + $0x70] sm:$0xff]  ;;  %v223_v25 = vld [vmem:[#allocation7 + $0xc8] sm:$0xff]  ;;  %v222_v27 = vld [vmem:[#allocation7 + $0xc0] sm:$0xff] }
  0x3d   :  { %133 = vmatprep.subr.mxu0 %v104_v9  ;;  %277 = vmatpush1.msra.mxu1 %v226_v19  ;;  %v94_v26 = vld [vmem:[#allocation5 + $0x68] sm:$0xff]  ;;  %v93_v28 = vld [vmem:[#allocation5 + $0x60] sm:$0xff]  ;;  %v221_v29 = vld [vmem:[#allocation7 + $0xb8] sm:$0xff] }
  0x3e   :  { %134 = vmatpush1.msra.mxu0 %v103_v10  ;;  %278 = vmatprep.subr.mxu1 %v225_v21  ;;  %v92_v30 = vld [vmem:[#allocation5 + $0x58] sm:$0xff]  ;;  %v220_v31 = vld [vmem:[#allocation7 + $0xb0] sm:$0xff]  ;;  %v219_v33 = vld [vmem:[#allocation7 + $0xa8] sm:$0xff] }
  0x3f   :  { %135 = vmatprep.subr.mxu0 %v102_v11  ;;  %279 = vmatpush1.msra.mxu1 %v224_v23  ;;  %v91_v32 = vld [vmem:[#allocation5 + $0x50] sm:$0xff]  ;;  %v90_v34 = vld [vmem:[#allocation5 + $0x48] sm:$0xff]  ;;  %v218_v35 = vld [vmem:[#allocation7 + $0xa0] sm:$0xff] }
  0x40   :  { %136 = vmatpush1.msra.mxu0 %v101_v12  ;;  %280 = vmatprep.subr.mxu1 %v223_v25  ;;  %v89_v36 = vld [vmem:[#allocation5 + $0x40] sm:$0xff]  ;;  %v217_v37 = vld [vmem:[#allocation7 + $0x98] sm:$0xff]  ;;  %v216_v39 = vld [vmem:[#allocation7 + $0x90] sm:$0xff] }
  0x41   :  { %137 = vmatprep.subr.mxu0 %v100_v13  ;;  %281 = vmatpush1.msra.mxu1 %v222_v27  ;;  %v88_v38 = vld [vmem:[#allocation5 + $0x38] sm:$0xff]  ;;  %v87_v40 = vld [vmem:[#allocation5 + $0x30] sm:$0xff]  ;;  %v215_v41 = vld [vmem:[#allocation7 + $0x88] sm:$0xff] }
  0x42   :  { %138 = vmatpush1.msra.mxu0 %v99_v14  ;;  %282 = vmatprep.subr.mxu1 %v221_v29  ;;  %v86_v42 = vld [vmem:[#allocation5 + $0x28] sm:$0xff]  ;;  %v214_v43 = vld [vmem:[#allocation7 + $0x80] sm:$0xff]  ;;  %v213_v45 = vld [vmem:[#allocation7 + $0x78] sm:$0xff] }
  0x43   :  { %139 = vmatprep.subr.mxu0 %v98_v18  ;;  %283 = vmatpush1.msra.mxu1 %v220_v31  ;;  %v85_v44 = vld [vmem:[#allocation5 + $0x20] sm:$0xff]  ;;  %v84_v46 = vld [vmem:[#allocation5 + $0x18] sm:$0xff]  ;;  %v212_v47 = vld [vmem:[#allocation7 + $0x70] sm:$0xff] }
  0x44   :  { %140 = vmatpush1.msra.mxu0 %v97_v20  ;;  %284 = vmatprep.subr.mxu1 %v219_v33  ;;  %v83_v48 = vld [vmem:[#allocation5 + $0x10] sm:$0xff]  ;;  %v211_v49 = vld [vmem:[#allocation7 + $0x68] sm:$0xff]  ;;  %v210_v51 = vld [vmem:[#allocation7 + $0x60] sm:$0xff] }
  0x45   :  { %141 = vmatprep.subr.mxu0 %v96_v22  ;;  %285 = vmatpush1.msra.mxu1 %v218_v35  ;;  %v82_v50 = vld [vmem:[#allocation5 + $0x8] sm:$0xff]  ;;  %v81_v52 = vld [vmem:[#allocation5] sm:$0xff]  ;;  %v209_v53 = vld [vmem:[#allocation7 + $0x58] sm:$0xff] }
  0x46   :  { %142 = vmatpush1.msra.mxu0 %v95_v24  ;;  %286 = vmatprep.subr.mxu1 %v217_v37  ;;  %v80_v54 = vld [vmem:[#allocation2] sm:$0xff]  ;;  %v208_v55 = vld [vmem:[#allocation7 + $0x50] sm:$0xff]  ;;  %v207_v56 = vld [vmem:[#allocation7 + $0x48] sm:$0xff] }
  0x47   :  { %143 = vmatprep.subr.mxu0 %v94_v26  ;;  %287 = vmatpush1.msra.mxu1 %v216_v39  ;;  %v206_v57 = vld [vmem:[#allocation7 + $0x40] sm:$0xff]  ;;  %v205_v58 = vld [vmem:[#allocation7 + $0x38] sm:$0xff]  ;;  %v204_v59 = vld [vmem:[#allocation7 + $0x30] sm:$0xff] }
  0x48   :  { %144 = vmatpush1.msra.mxu0 %v93_v28  ;;  %288 = vmatprep.subr.mxu1 %v215_v41  ;;  %v203_v60 = vld [vmem:[#allocation7 + $0x28] sm:$0xff]  ;;  %v202_v61 = vld [vmem:[#allocation7 + $0x20] sm:$0xff]  ;;  %v201_v62 = vld [vmem:[#allocation7 + $0x18] sm:$0xff] }
  0x49   :  { %145 = vmatprep.subr.mxu0 %v92_v30  ;;  %289 = vmatpush1.msra.mxu1 %v214_v43  ;;  %v200_v63 = vld [vmem:[#allocation7 + $0x10] sm:$0xff]  ;;  %v199_v0 = vld [vmem:[#allocation7 + $0x8] sm:$0xff]  ;;  %v198_v1 = vld [vmem:[#allocation7] sm:$0xff] }
  0x4a   :  { %146 = vmatpush1.msra.mxu0 %v91_v32  ;;  %290 = vmatprep.subr.mxu1 %v213_v45  ;;  %v261_v2 = vld [vmem:[#allocation7 + $0x1f8] sm:$0xff]  ;;  %v260_v3 = vld [vmem:[#allocation7 + $0x1f0] sm:$0xff]  ;;  %v259_v4 = vld [vmem:[#allocation7 + $0x1e8] sm:$0xff] }
  0x4b   :  { %147 = vmatprep.subr.mxu0 %v90_v34  ;;  %291 = vmatpush1.msra.mxu1 %v212_v47  ;;  %v258_v5 = vld [vmem:[#allocation7 + $0x1e0] sm:$0xff]  ;;  %v257_v6 = vld [vmem:[#allocation7 + $0x1d8] sm:$0xff]  ;;  %v256_v7 = vld [vmem:[#allocation7 + $0x1d0] sm:$0xff] }
  0x4c   :  { %148 = vmatpush1.msra.mxu0 %v89_v36  ;;  %292 = vmatprep.subr.mxu1 %v211_v49  ;;  %v255_v8 = vld [vmem:[#allocation7 + $0x1c8] sm:$0xff]  ;;  %v254_v9 = vld [vmem:[#allocation7 + $0x1c0] sm:$0xff]  ;;  %v253_v10 = vld [vmem:[#allocation7 + $0x1b8] sm:$0xff] }
  0x4d   :  { %149 = vmatprep.subr.mxu0 %v88_v38  ;;  %293 = vmatpush1.msra.mxu1 %v210_v51  ;;  %v252_v11 = vld [vmem:[#allocation7 + $0x1b0] sm:$0xff]  ;;  %v251_v12 = vld [vmem:[#allocation7 + $0x1a8] sm:$0xff]  ;;  %v250_v13 = vld [vmem:[#allocation7 + $0x1a0] sm:$0xff] }
  0x4e   :  { %150 = vmatpush1.msra.mxu0 %v87_v40  ;;  %294 = vmatprep.subr.mxu1 %v209_v53  ;;  %v249_v14 = vld [vmem:[#allocation7 + $0x198] sm:$0xff]  ;;  %v248_v15 = vld [vmem:[#allocation7 + $0x190] sm:$0xff]  ;;  %v247_v16 = vld [vmem:[#allocation7 + $0x188] sm:$0xff] }
  0x4f   :  { %151 = vmatprep.subr.mxu0 %v86_v42  ;;  %295 = vmatpush1.msra.mxu1 %v208_v55  ;;  %v246_v17 = vld [vmem:[#allocation7 + $0x180] sm:$0xff]  ;;  %v245_v18 = vld [vmem:[#allocation7 + $0x178] sm:$0xff]  ;;  %v244_v19 = vld [vmem:[#allocation7 + $0x170] sm:$0xff] }
  0x50   :  { %152 = vmatpush1.msra.mxu0 %v85_v44  ;;  %296 = vmatprep.subr.mxu1 %v207_v56  ;;  %v243_v20 = vld [vmem:[#allocation7 + $0x168] sm:$0xff]  ;;  %v242_v21 = vld [vmem:[#allocation7 + $0x160] sm:$0xff]  ;;  %v241_v22 = vld [vmem:[#allocation7 + $0x158] sm:$0xff] }
  0x51   :  { %153 = vmatprep.subr.mxu0 %v84_v46  ;;  %297 = vmatpush1.msra.mxu1 %v206_v57  ;;  %v240_v23 = vld [vmem:[#allocation7 + $0x150] sm:$0xff]  ;;  %v239_v24 = vld [vmem:[#allocation7 + $0x148] sm:$0xff]  ;;  %v238_v25 = vld [vmem:[#allocation7 + $0x140] sm:$0xff] }
  0x52   :  { %154 = vmatpush1.msra.mxu0 %v83_v48  ;;  %298 = vmatprep.subr.mxu1 %v205_v58  ;;  %v237_v26 = vld [vmem:[#allocation7 + $0x138] sm:$0xff]  ;;  %v236_v27 = vld [vmem:[#allocation7 + $0x130] sm:$0xff]  ;;  %v235_v28 = vld [vmem:[#allocation7 + $0x128] sm:$0xff]  ;;  %v115_v58 = vlaneseq }
  0x53   :  { %155 = vmatprep.subr.mxu0 %v82_v50  ;;  %299 = vmatpush1.msra.mxu1 %v204_v59  ;;  %v234_v29 = vld [vmem:[#allocation7 + $0x120] sm:$0xff]  ;;  %v233_v30 = vld [vmem:[#allocation7 + $0x118] sm:$0xff]  ;;  %v232_v31 = vld [vmem:[#allocation7 + $0x110] sm:$0xff] }
  0x54   :  { %156 = vmatpush1.msra.mxu0 %v81_v52  ;;  %300 = vmatprep.subr.mxu1 %v203_v60  ;;  %v231_v32 = vld [vmem:[#allocation7 + $0x108] sm:$0xff]  ;;  %v230_v33 = vld [vmem:[#allocation7 + $0x100] sm:$0xff]  ;;  %v378_v34 = vld [vmem:[#allocation8 + $0xf8] sm:$0xff]  ;;  %v116_v59 = vshrl.u32 %v115_v58, 7 }
  0x55   :  { %190 = vmatmul.mubr.f32.vlgmr.msra.gmra.mxu0 %v80_v54  ;;  %301 = vmatpush1.msra.mxu1 %v202_v61  ;;  %v362_v35 = vld [vmem:[#allocation8 + $0x78] sm:$0xff]  ;;  %v377_v36 = vld [vmem:[#allocation8 + $0xf0] sm:$0xff]  ;;  %v376_v38 = vld [vmem:[#allocation8 + $0xe8] sm:$0xff] }
  0x56   :  { %302 = vmatprep.subr.mxu1 %v201_v62  ;;  %485 = vmatprep.subr.mxu0 %v378_v34  ;;  %v361_v37 = vld [vmem:[#allocation8 + $0x70] sm:$0xff]  ;;  %v360_v39 = vld [vmem:[#allocation8 + $0x68] sm:$0xff]  ;;  %v375_v40 = vld [vmem:[#allocation8 + $0xe0] sm:$0xff]  ;;  %v117_v60 = vsub.s32 0, %v116_v59  ;;  %v121_v62 = vsub.s32 1, %v116_v59 }
  0x57   :  { %303 = vmatpush1.msra.mxu1 %v200_v63  ;;  %486 = vmatpush3.msra.mxu0 %v362_v35  ;;  %v359_v41 = vld [vmem:[#allocation8 + $0x60] sm:$0xff]  ;;  %v374_v42 = vld [vmem:[#allocation8 + $0xd8] sm:$0xff]  ;;  %v373_v44 = vld [vmem:[#allocation8 + $0xd0] sm:$0xff] }
  0x58   :  { %304 = vmatprep.subr.mxu1 %v199_v0  ;;  %487 = vmatprep.subr.mxu0 %v377_v36  ;;  %v358_v43 = vld [vmem:[#allocation8 + $0x58] sm:$0xff]  ;;  %v357_v45 = vld [vmem:[#allocation8 + $0x50] sm:$0xff]  ;;  %v372_v46 = vld [vmem:[#allocation8 + $0xc8] sm:$0xff] }
  0x59   :  { %305 = vmatpush1.msra.mxu1 %v198_v1  ;;  %488 = vmatpush3.msra.mxu0 %v361_v37  ;;  %v356_v47 = vld [vmem:[#allocation8 + $0x48] sm:$0xff]  ;;  %v371_v48 = vld [vmem:[#allocation8 + $0xc0] sm:$0xff]  ;;  %v370_v50 = vld [vmem:[#allocation8 + $0xb8] sm:$0xff] }
  0x5a   :  { %306 = vmatprep.subr.mxu1 %v261_v2  ;;  %489 = vmatprep.subr.mxu0 %v376_v38  ;;  %v355_v49 = vld [vmem:[#allocation8 + $0x40] sm:$0xff]  ;;  %v354_v51 = vld [vmem:[#allocation8 + $0x38] sm:$0xff]  ;;  %v369_v52 = vld [vmem:[#allocation8 + $0xb0] sm:$0xff] }
  0x5b   :  { %307 = vmatpush2.msra.mxu1 %v260_v3  ;;  %490 = vmatpush3.msra.mxu0 %v360_v39  ;;  %v353_v53 = vld [vmem:[#allocation8 + $0x30] sm:$0xff]  ;;  %v368_v54 = vld [vmem:[#allocation8 + $0xa8] sm:$0xff]  ;;  %v367_v56 = vld [vmem:[#allocation8 + $0xa0] sm:$0xff] }
  0x5c   :  { %308 = vmatprep.subr.mxu1 %v259_v4  ;;  %491 = vmatprep.subr.mxu0 %v375_v40  ;;  %v352_v55 = vld [vmem:[#allocation8 + $0x28] sm:$0xff]  ;;  %v351_v57 = vld [vmem:[#allocation8 + $0x20] sm:$0xff]  ;;  %v113_v61 = vld [vmem:[%s718_s2] sm:$0x3] }
  0x5d   :  { %309 = vmatpush2.msra.mxu1 %v258_v5  ;;  %492 = vmatpush3.msra.mxu0 %v359_v41  ;;  %v118_v63 = vrot.slane %v113_v61, %v117_v60  ;;  %v122_v0 = vrot.slane %v113_v61, %v121_v62 }
  0x5e   :  { %310 = vmatprep.subr.mxu1 %v257_v6  ;;  %493 = vmatprep.subr.mxu0 %v374_v42 }
  0x5f   :  { %311 = vmatpush2.msra.mxu1 %v256_v7  ;;  %494 = vmatpush3.msra.mxu0 %v358_v43  ;;  %v366_v7 = vld [vmem:[#allocation8 + $0x98] sm:$0xff] }
  0x60   :  { %312 = vmatprep.subr.mxu1 %v255_v8  ;;  %495 = vmatprep.subr.mxu0 %v373_v44  ;;  %v350_v8 = vld [vmem:[#allocation8 + $0x18] sm:$0xff] }
  0x61   :  { %313 = vmatpush2.msra.mxu1 %v254_v9  ;;  %496 = vmatpush3.msra.mxu0 %v357_v45  ;;  %v365_v9 = vld [vmem:[#allocation8 + $0x90] sm:$0xff] }
  0x62   :  { %314 = vmatprep.subr.mxu1 %v253_v10  ;;  %497 = vmatprep.subr.mxu0 %v372_v46  ;;  %v349_v10 = vld [vmem:[#allocation8 + $0x10] sm:$0xff] }
  0x63   :  { %315 = vmatpush2.msra.mxu1 %v252_v11  ;;  %498 = vmatpush3.msra.mxu0 %v356_v47  ;;  %v364_v11 = vld [vmem:[#allocation8 + $0x88] sm:$0xff] }
  0x64   :  { %316 = vmatprep.subr.mxu1 %v251_v12  ;;  %499 = vmatprep.subr.mxu0 %v371_v48  ;;  %v348_v12 = vld [vmem:[#allocation8 + $0x8] sm:$0xff] }
  0x65   :  { %317 = vmatpush2.msra.mxu1 %v250_v13  ;;  %500 = vmatpush3.msra.mxu0 %v355_v49  ;;  %v363_v13 = vld [vmem:[#allocation8 + $0x80] sm:$0xff] }
  0x66   :  { %318 = vmatprep.subr.mxu1 %v249_v14  ;;  %501 = vmatprep.subr.mxu0 %v370_v50  ;;  %v347_v14 = vld [vmem:[#allocation8] sm:$0xff] }
  0x67   :  { %319 = vmatpush2.msra.mxu1 %v248_v15  ;;  %502 = vmatpush3.msra.mxu0 %v354_v51  ;;  %v262_v15 = vld [vmem:[%s720_s4] sm:$0x3]  ;;  %s651_s4 = smov [#allocation10]  }
  0x68   :  { %320 = vmatprep.subr.mxu1 %v247_v16  ;;  %503 = vmatprep.subr.mxu0 %v369_v52  ;;  %v267_v16 = vrot.slane %v262_v15, %v117_v60  ;;  %s473_s26 = sshll.u32 %s651_s4, 4  ;;  %s474_s26 = int_to_ptr.vmem [resolvable:$true] %s473_s26 }
  0x69   :  { %321 = vmatpush2.msra.mxu1 %v246_v17  ;;  %504 = vmatpush3.msra.mxu0 %v353_v53  ;;  %v271_v17 = vrot.slane %v262_v15, %v121_v62  ;;  %s614_s27 = scalar_lea.vmem %s474_s26, 128  ;;  %p619_p7 = scmp.lt.s32.totalorder %s474_s26, %s474_s26 }
  0x6a   :  { %322 = vmatprep.subr.mxu1 %v245_v18  ;;  %505 = vmatprep.subr.mxu0 %v368_v54  ;;  %p615_p6 = scmp.ne.s32.totalorder %s474_s26, %s614_s27  ;;  %p620_p8 = scmp.lt.s32.totalorder %s614_s27, %s614_s27 }
  0x6b   :  { %323 = vmatpush2.msra.mxu1 %v244_v19  ;;  %506 = vmatpush3.msra.mxu0 %v352_v55 }
  0x6c   :  { %324 = vmatprep.subr.mxu1 %v243_v20  ;;  %507 = vmatprep.subr.mxu0 %v367_v56  ;;  %p621_p9 = por %p620_p8, %p619_p7 }
  0x6d   :  { %325 = vmatpush2.msra.mxu1 %v242_v21  ;;  %508 = vmatpush3.msra.mxu0 %v351_v57 }
  0x6e   :  { %326 = vmatprep.subr.mxu1 %v241_v22  ;;  %509 = vmatprep.subr.mxu0 %v366_v7  ;;  %p622_p10 = pnand %p621_p9, %p615_p6 }
  0x6f   :  { %327 = vmatpush2.msra.mxu1 %v240_v23  ;;  %510 = vmatpush3.msra.mxu0 %v350_v8 }
  0x70   :  { %328 = vmatprep.subr.mxu1 %v239_v24  ;;  %511 = vmatprep.subr.mxu0 %v365_v9 }
  0x71   :  { %329 = vmatpush2.msra.mxu1 %v238_v25  ;;  %512 = vmatpush3.msra.mxu0 %v349_v10 }
  0x72   :  { %330 = vmatprep.subr.mxu1 %v237_v26  ;;  %513 = vmatprep.subr.mxu0 %v364_v11  ;;  %v484_v26 = vld [vmem:[%s722_s6] ss:$0 sm:$0xff] }
  0x73   :  { %331 = vmatpush2.msra.mxu1 %v236_v27  ;;  %514 = vmatpush3.msra.mxu0 %v348_v12 }
  0x74   :  { %332 = vmatprep.subr.mxu1 %v235_v28  ;;  %515 = vmatprep.subr.mxu0 %v363_v13 }
  0x75   :  { %333 = vmatpush2.msra.mxu1 %v234_v29  ;;  %516 = vmatpush3.msra.mxu0 %v347_v14 }
  0x76   :  { %334 = vmatprep.subr.mxu1 %v233_v30 }
  0x77   :  { %335 = vmatpush2.msra.mxu1 %v232_v31 }
  0x78   :  { %336 = vmatprep.subr.mxu1 %v231_v32 }
  0x79   :  { %337 = vmatpush2.msra.mxu1 %v230_v33 }
 0x115   :  { %v191_v1 = vpop.f32.mrf.mxu0 }
 0x116   :  { %v192_v2 = vadd.f32 %v191_v1, %v118_v63 }
 0x117   :  { %v193_v3 = vpop.f32.mrf.mxu0 }
 0x118   :  { %v194_v4 = vadd.f32 %v193_v3, %v122_v0  ;;  %v196_v6 = vmax.f32 %v192_v2, 0.0 }
 0x11a   :  { %v197_v5 = vmax.f32 %v194_v4, 0.0 }
 0x11c   :  { %338 = vmatprep.mubr.f32.mxu1 %v197_v5 }
 0x11d   :  { %339 = vmatmul.mubr.f32.vlgmr.msra.gmra.mxu1 %v196_v6 }
 0x1dd   :  { %v340_v18 = vpop.f32.mrf.mxu1 }
 0x1de   :  { %v341_v19 = vadd.f32 %v340_v18, %v267_v16 }
 0x1df   :  { %v342_v20 = vpop.f32.mrf.mxu1 }
 0x1e0   :  { %v343_v21 = vadd.f32 %v342_v20, %v271_v17  ;;  %v345_v23 = vmax.f32 %v341_v19, 0.0 }
 0x1e2   :  { %v346_v22 = vmax.f32 %v343_v21, 0.0 }
 0x1e4   :  { %450 = vmatprep.mubr.f32.mxu0 %v346_v22 }
 0x1e5   :  { %451 = vmatmul.mubr.f32.vlgmr.msra.gmra.mxu0 %v345_v23 }
 0x2a5   :  { %v517_v24 = vpop.f32.mrf.mxu0 }
 0x2a7   :  { %v518_v25 = vpop.f32.mrf.mxu0 }
 0x2a8   :  { %v519_v27 = vadd.f32 %v518_v25, %v517_v24 }
 0x2aa   :  { %v453_v28 = vadd.f32 %v519_v27, %v484_v26 }
 0x2ac   :  { %456 = vmax.xlane.f32.xlu0 %v453_v28 }
 0x335   :  { %v457_v29 = vpop.xlane.xlu0 %456 }
 0x336   :  { %v458_v30 = vsub.f32 %v453_v28, %v457_v29 }
 0x338   :  { %v459_v31 = vmul.f32 1.442695, %v458_v30 }
 0x33a   :  { %530 = vpow2.f32 %v459_v31 }
 0x347   :  { %v531_v32 = vpop.eup %530 }
 0x348   :  { %461 = vadd.xlane.f32.xlu0 %v531_v32 }
 0x3d1   :  { %v462_v33 = vpop.xlane.xlu0 %461 }
 0x3d2   :  { %532 = vlog2.f32 %v462_v33 }
 0x3df   :  { %v533_v34 = vpop.eup %532 }
 0x3e0   :  { %v464_v35 = vmul.f32 0.6931472, %v533_v34 }
 0x3e2   :  { %v465_v36 = vsub.f32 %v458_v30, %v464_v35 }
 0x3e4   :  { %466 = vst [vmem:[#allocation10] sm:$0xff] %v465_v36 }
 0x3e5   :  { %625 = shalt.err (!%p622_p10)
}
 0x3e6   :  { %476 = dma.vmem_to_hbm [thread:$0]  %s474_s26, 128, %s723_s7, [#allocation4]  }
 0x3e7   :  { %640 = dma.done.wait [#allocation4], 128  }
 0x3e8   :  { %641 = vsyncadd [#allocation4], 4294967168 }
 0x3e9   :  { %480 = vsyncpa [#allocation3], 1 }
 0x3ea   :  { %481 = vsyncpa [#allocation6], 1 }
 0x3eb   :  { %482 = vsyncpa [#allocation9], 1 }
 0x3ec   :  { %483 = vsyncpa [#allocation4], 1 }

// kernel: tpu_custom_call.1
= control target key start
LH: loop header
LB: loop body
LE: loop exit
PB: predicated region body
PF: predicated region fallthrough
CT: control target
= control target key end

     0   :  { %12 = vsyncpa [#allocation3], 0  ;;  %s716_s0 = inlined_call_operand.hbm [shape: f32[8,128], index: 0, kind: input, shape index: {}]   ;;  %s717_s1 = inlined_call_operand.hbm [shape: f32[128,256], index: 1, kind: input, shape index: {}]   ;;  %s718_s2 = inlined_call_operand.vmem [shape: f32[1,256], index: 2, kind: input, shape index: {}]   ;;  %s719_s3 = inlined_call_operand.hbm [shape: f32[256,256], index: 3, kind: input, shape index: {}]   ;;  %s720_s4 = inlined_call_operand.vmem [shape: f32[1,256], index: 4, kind: input, shape index: {}]   ;;  %s721_s5 = inlined_call_operand.hbm [shape: f32[256,128], index: 5, kind: input, shape index: {}]   ;;  %s722_s6 = inlined_call_operand.vmem [shape: f32[1,128], index: 6, kind: input, shape index: {}]   ;;  %s723_s7 = inlined_call_operand.hbm [shape: f32[8,128], index: 7, kind: output, shape index: {}]  }
   0x1   :  { %13 = vsyncpa [#allocation6], 0 }
   0x2   :  { %14 = vsyncpa [#allocation9], 0 }
   0x3   :  { %15 = vsyncpa [#allocation4], 0  ;;  %s642_s24 = smov [#allocation5]  }
   0x4   :  { %s31_s25 = sshll.u32 %s642_s24, 4  ;;  %s32_s25 = int_to_ptr.vmem [resolvable:$true] %s31_s25 }
   0x5   :  { %s542_s26 = scalar_lea.vmem %s32_s25, 4096  ;;  %p547_p1 = scmp.lt.s32.totalorder %s32_s25, %s32_s25 }
   0x6   :  { %p543_p0 = scmp.ne.s32.totalorder %s32_s25, %s542_s26  ;;  %p548_p2 = scmp.lt.s32.totalorder %s542_s26, %s542_s26 }
   0x8   :  { %p549_p3 = por %p548_p2, %p547_p1 }
   0xa   :  { %p550_p4 = pnand %p549_p3, %p543_p0 }
   0xc   :  { %553 = shalt.err (!%p550_p4)
}
   0xd   :  { %s643_s27 = smov 256   ;;  %s644_s28 = smov 16  }
   0xe   :  { %37 = dma.hbm_to_vmem [thread:$0]  %s717_s1, 4096, %s32_s25, [#allocation6], %s643_s27, %s643_s27, %s644_s28  }
   0xf   :  { %s645_s8 = smov [#allocation2]   ;;  %s646_s10 = smov [#allocation7]  }
  0x10   :  { %s22_s9 = sshll.u32 %s645_s8, 4  ;;  %s45_s11 = sshll.u32 %s646_s10, 4  ;;  %s23_s9 = int_to_ptr.vmem [resolvable:$true] %s22_s9  ;;  %s46_s11 = int_to_ptr.vmem [resolvable:$true] %s45_s11 }
  0x11   :  { %s562_s12 = scalar_lea.vmem %s23_s9, 128  ;;  %p567_p6 = scmp.lt.s32.totalorder %s23_s9, %s23_s9 }
  0x12   :  { %p563_p5 = scmp.ne.s32.totalorder %s23_s9, %s562_s12  ;;  %p568_p7 = scmp.lt.s32.totalorder %s562_s12, %s562_s12 }
  0x14   :  { %p569_p8 = por %p568_p7, %p567_p6 }
  0x16   :  { %p570_p9 = pnand %p569_p8, %p563_p5 }
  0x18   :  { %573 = shalt.err (!%p570_p9)
}
  0x19   :  { %25 = dma.hbm_to_vmem [thread:$0]  %s716_s0, 128, %s23_s9, [#allocation3]  }
  0x1a   :  { %s582_s15 = scalar_lea.vmem %s46_s11, 8192  ;;  %p587_p11 = scmp.lt.s32.totalorder %s46_s11, %s46_s11 }
  0x1b   :  { %p583_p10 = scmp.ne.s32.totalorder %s46_s11, %s582_s15  ;;  %p588_p12 = scmp.lt.s32.totalorder %s582_s15, %s582_s15 }
  0x1d   :  { %p589_p13 = por %p588_p12, %p587_p11 }
  0x1f   :  { %p590_p0 = pnand %p589_p13, %p583_p10 }
  0x21   :  { %593 = shalt.err (!%p590_p0)
}
  0x22   :  { %51 = dma.hbm_to_vmem [thread:$0]  %s719_s3, 8192, %s46_s11, [#allocation6], %s643_s27, %s643_s27, %s644_s28  }
  0x23   :  { %s647_s17 = smov [#allocation8]  }
  0x24   :  { %s59_s18 = sshll.u32 %s647_s17, 4  ;;  %s60_s18 = int_to_ptr.vmem [resolvable:$true] %s59_s18 }
  0x25   :  { %s602_s19 = scalar_lea.vmem %s60_s18, 4096  ;;  %p607_p2 = scmp.lt.s32.totalorder %s60_s18, %s60_s18 }
  0x26   :  { %p603_p1 = scmp.ne.s32.totalorder %s60_s18, %s602_s19  ;;  %p608_p3 = scmp.lt.s32.totalorder %s602_s19, %s602_s19 }
  0x28   :  { %p609_p4 = por %p608_p3, %p607_p2 }
  0x2a   :  { %p610_p5 = pnand %p609_p4, %p603_p1 }
  0x2c   :  { %613 = shalt.err (!%p610_p5)
}
  0x2d   :  { %s648_s0 = smov 128   ;;  %s649_s20 = smov 8  }
  0x2e   :  { %65 = dma.hbm_to_vmem [thread:$0]  %s721_s5, 4096, %s60_s18, [#allocation9], %s648_s0, %s648_s0, %s649_s20  }
  0x2f   :  { %634 = dma.done.wait [#allocation3], 128  }
  0x30   :  { %635 = vsyncadd [#allocation3], 4294967168 }
  0x31   :  { %636 = dma.done.wait [#allocation6], 12288  }
  0x32   :  { %637 = vsyncadd [#allocation6], 4294955008 }
  0x33   :  { %638 = dma.done.wait [#allocation9], 4096  }
  0x34   :  { %639 = vsyncadd [#allocation9], 4294963200  ;;  %v650_v0 = vmov 0.0   ;;  %v112_v1 = vld [vmem:[#allocation5 + $0xf8] sm:$0xff]  ;;  %v111_v2 = vld [vmem:[#allocation5 + $0xf0] sm:$0xff] }
  0x35   :  { %189 = vmatprep.mubr.f32.mxu0 %v650_v0  ;;  %v110_v3 = vld [vmem:[#allocation5 + $0xe8] sm:$0xff]  ;;  %125 = vmatprep.subr.mxu0 %v112_v1  ;;  %v109_v4 = vld [vmem:[#allocation5 + $0xe0] sm:$0xff]  ;;  %v108_v5 = vld [vmem:[#allocation5 + $0xd8] sm:$0xff] }
  0x36   :  { %126 = vmatpush1.msra.mxu0 %v111_v2  ;;  %v107_v6 = vld [vmem:[#allocation5 + $0xd0] sm:$0xff]  ;;  %v106_v7 = vld [vmem:[#allocation5 + $0xc8] sm:$0xff]  ;;  %v105_v8 = vld [vmem:[#allocation5 + $0xc0] sm:$0xff] }
  0x37   :  { %127 = vmatprep.subr.mxu0 %v110_v3  ;;  %v104_v9 = vld [vmem:[#allocation5 + $0xb8] sm:$0xff]  ;;  %v103_v10 = vld [vmem:[#allocation5 + $0xb0] sm:$0xff]  ;;  %v102_v11 = vld [vmem:[#allocation5 + $0xa8] sm:$0xff] }
  0x38   :  { %128 = vmatpush1.msra.mxu0 %v109_v4  ;;  %v101_v12 = vld [vmem:[#allocation5 + $0xa0] sm:$0xff]  ;;  %v100_v13 = vld [vmem:[#allocation5 + $0x98] sm:$0xff]  ;;  %v99_v14 = vld [vmem:[#allocation5 + $0x90] sm:$0xff] }
  0x39   :  { %129 = vmatprep.subr.mxu0 %v108_v5  ;;  %v229_v15 = vld [vmem:[#allocation7 + $0xf8] sm:$0xff]  ;;  %v228_v16 = vld [vmem:[#allocation7 + $0xf0] sm:$0xff]  ;;  %v227_v17 = vld [vmem:[#allocation7 + $0xe8] sm:$0xff] }
  0x3a   :  { %130 = vmatpush1.msra.mxu0 %v107_v6  ;;  %v98_v18 = vld [vmem:[#allocation5 + $0x88] sm:$0xff]  ;;  %274 = vmatprep.subr.mxu1 %v229_v15  ;;  %v226_v19 = vld [vmem:[#allocation7 + $0xe0] sm:$0xff]  ;;  %v225_v21 = vld [vmem:[#allocation7 + $0xd8] sm:$0xff] }
  0x3b   :  { %131 = vmatprep.subr.mxu0 %v106_v7  ;;  %v97_v20 = vld [vmem:[#allocation5 + $0x80] sm:$0xff]  ;;  %275 = vmatpush1.msra.mxu1 %v228_v16  ;;  %v96_v22 = vld [vmem:[#allocation5 + $0x78] sm:$0xff]  ;;  %v224_v23 = vld [vmem:[#allocation7 + $0xd0] sm:$0xff] }
  0x3c   :  { %132 = vmatpush1.msra.mxu0 %v105_v8  ;;  %276 = vmatprep.subr.mxu1 %v227_v17  ;;  %v95_v24 = vld [vmem:[#allocation5 + $0x70] sm:$0xff]  ;;  %v223_v25 = vld [vmem:[#allocation7 + $0xc8] sm:$0xff]  ;;  %v222_v27 = vld [vmem:[#allocation7 + $0xc0] sm:$0xff] }
  0x3d   :  { %133 = vmatprep.subr.mxu0 %v104_v9  ;;  %277 = vmatpush1.msra.mxu1 %v226_v19  ;;  %v94_v26 = vld [vmem:[#allocation5 + $0x68] sm:$0xff]  ;;  %v93_v28 = vld [vmem:[#allocation5 + $0x60] sm:$0xff]  ;;  %v221_v29 = vld [vmem:[#allocation7 + $0xb8] sm:$0xff] }
  0x3e   :  { %134 = vmatpush1.msra.mxu0 %v103_v10  ;;  %278 = vmatprep.subr.mxu1 %v225_v21  ;;  %v92_v30 = vld [vmem:[#allocation5 + $0x58] sm:$0xff]  ;;  %v220_v31 = vld [vmem:[#allocation7 + $0xb0] sm:$0xff]  ;;  %v219_v33 = vld [vmem:[#allocation7 + $0xa8] sm:$0xff] }
  0x3f   :  { %135 = vmatprep.subr.mxu0 %v102_v11  ;;  %279 = vmatpush1.msra.mxu1 %v224_v23  ;;  %v91_v32 = vld [vmem:[#allocation5 + $0x50] sm:$0xff]  ;;  %v90_v34 = vld [vmem:[#allocation5 + $0x48] sm:$0xff]  ;;  %v218_v35 = vld [vmem:[#allocation7 + $0xa0] sm:$0xff] }
  0x40   :  { %136 = vmatpush1.msra.mxu0 %v101_v12  ;;  %280 = vmatprep.subr.mxu1 %v223_v25  ;;  %v89_v36 = vld [vmem:[#allocation5 + $0x40] sm:$0xff]  ;;  %v217_v37 = vld [vmem:[#allocation7 + $0x98] sm:$0xff]  ;;  %v216_v39 = vld [vmem:[#allocation7 + $0x90] sm:$0xff] }
  0x41   :  { %137 = vmatprep.subr.mxu0 %v100_v13  ;;  %281 = vmatpush1.msra.mxu1 %v222_v27  ;;  %v88_v38 = vld [vmem:[#allocation5 + $0x38] sm:$0xff]  ;;  %v87_v40 = vld [vmem:[#allocation5 + $0x30] sm:$0xff]  ;;  %v215_v41 = vld [vmem:[#allocation7 + $0x88] sm:$0xff] }
  0x42   :  { %138 = vmatpush1.msra.mxu0 %v99_v14  ;;  %282 = vmatprep.subr.mxu1 %v221_v29  ;;  %v86_v42 = vld [vmem:[#allocation5 + $0x28] sm:$0xff]  ;;  %v214_v43 = vld [vmem:[#allocation7 + $0x80] sm:$0xff]  ;;  %v213_v45 = vld [vmem:[#allocation7 + $0x78] sm:$0xff] }
  0x43   :  { %139 = vmatprep.subr.mxu0 %v98_v18  ;;  %283 = vmatpush1.msra.mxu1 %v220_v31  ;;  %v85_v44 = vld [vmem:[#allocation5 + $0x20] sm:$0xff]  ;;  %v84_v46 = vld [vmem:[#allocation5 + $0x18] sm:$0xff]  ;;  %v212_v47 = vld [vmem:[#allocation7 + $0x70] sm:$0xff] }
  0x44   :  { %140 = vmatpush1.msra.mxu0 %v97_v20  ;;  %284 = vmatprep.subr.mxu1 %v219_v33  ;;  %v83_v48 = vld [vmem:[#allocation5 + $0x10] sm:$0xff]  ;;  %v211_v49 = vld [vmem:[#allocation7 + $0x68] sm:$0xff]  ;;  %v210_v51 = vld [vmem:[#allocation7 + $0x60] sm:$0xff] }
  0x45   :  { %141 = vmatprep.subr.mxu0 %v96_v22  ;;  %285 = vmatpush1.msra.mxu1 %v218_v35  ;;  %v82_v50 = vld [vmem:[#allocation5 + $0x8] sm:$0xff]  ;;  %v81_v52 = vld [vmem:[#allocation5] sm:$0xff]  ;;  %v209_v53 = vld [vmem:[#allocation7 + $0x58] sm:$0xff] }
  0x46   :  { %142 = vmatpush1.msra.mxu0 %v95_v24  ;;  %286 = vmatprep.subr.mxu1 %v217_v37  ;;  %v80_v54 = vld [vmem:[#allocation2] sm:$0xff]  ;;  %v208_v55 = vld [vmem:[#allocation7 + $0x50] sm:$0xff]  ;;  %v207_v56 = vld [vmem:[#allocation7 + $0x48] sm:$0xff] }
  0x47   :  { %143 = vmatprep.subr.mxu0 %v94_v26  ;;  %287 = vmatpush1.msra.mxu1 %v216_v39  ;;  %v206_v57 = vld [vmem:[#allocation7 + $0x40] sm:$0xff]  ;;  %v205_v58 = vld [vmem:[#allocation7 + $0x38] sm:$0xff]  ;;  %v204_v59 = vld [vmem:[#allocation7 + $0x30] sm:$0xff] }
  0x48   :  { %144 = vmatpush1.msra.mxu0 %v93_v28  ;;  %288 = vmatprep.subr.mxu1 %v215_v41  ;;  %v203_v60 = vld [vmem:[#allocation7 + $0x28] sm:$0xff]  ;;  %v202_v61 = vld [vmem:[#allocation7 + $0x20] sm:$0xff]  ;;  %v201_v62 = vld [vmem:[#allocation7 + $0x18] sm:$0xff] }
  0x49   :  { %145 = vmatprep.subr.mxu0 %v92_v30  ;;  %289 = vmatpush1.msra.mxu1 %v214_v43  ;;  %v200_v63 = vld [vmem:[#allocation7 + $0x10] sm:$0xff]  ;;  %v199_v0 = vld [vmem:[#allocation7 + $0x8] sm:$0xff]  ;;  %v198_v1 = vld [vmem:[#allocation7] sm:$0xff] }
  0x4a   :  { %146 = vmatpush1.msra.mxu0 %v91_v32  ;;  %290 = vmatprep.subr.mxu1 %v213_v45  ;;  %v261_v2 = vld [vmem:[#allocation7 + $0x1f8] sm:$0xff]  ;;  %v260_v3 = vld [vmem:[#allocation7 + $0x1f0] sm:$0xff]  ;;  %v259_v4 = vld [vmem:[#allocation7 + $0x1e8] sm:$0xff] }
  0x4b   :  { %147 = vmatprep.subr.mxu0 %v90_v34  ;;  %291 = vmatpush1.msra.mxu1 %v212_v47  ;;  %v258_v5 = vld [vmem:[#allocation7 + $0x1e0] sm:$0xff]  ;;  %v257_v6 = vld [vmem:[#allocation7 + $0x1d8] sm:$0xff]  ;;  %v256_v7 = vld [vmem:[#allocation7 + $0x1d0] sm:$0xff] }
  0x4c   :  { %148 = vmatpush1.msra.mxu0 %v89_v36  ;;  %292 = vmatprep.subr.mxu1 %v211_v49  ;;  %v255_v8 = vld [vmem:[#allocation7 + $0x1c8] sm:$0xff]  ;;  %v254_v9 = vld [vmem:[#allocation7 + $0x1c0] sm:$0xff]  ;;  %v253_v10 = vld [vmem:[#allocation7 + $0x1b8] sm:$0xff] }
  0x4d   :  { %149 = vmatprep.subr.mxu0 %v88_v38  ;;  %293 = vmatpush1.msra.mxu1 %v210_v51  ;;  %v252_v11 = vld [vmem:[#allocation7 + $0x1b0] sm:$0xff]  ;;  %v251_v12 = vld [vmem:[#allocation7 + $0x1a8] sm:$0xff]  ;;  %v250_v13 = vld [vmem:[#allocation7 + $0x1a0] sm:$0xff] }
  0x4e   :  { %150 = vmatpush1.msra.mxu0 %v87_v40  ;;  %294 = vmatprep.subr.mxu1 %v209_v53  ;;  %v249_v14 = vld [vmem:[#allocation7 + $0x198] sm:$0xff]  ;;  %v248_v15 = vld [vmem:[#allocation7 + $0x190] sm:$0xff]  ;;  %v247_v16 = vld [vmem:[#allocation7 + $0x188] sm:$0xff] }
  0x4f   :  { %151 = vmatprep.subr.mxu0 %v86_v42  ;;  %295 = vmatpush1.msra.mxu1 %v208_v55  ;;  %v246_v17 = vld [vmem:[#allocation7 + $0x180] sm:$0xff]  ;;  %v245_v18 = vld [vmem:[#allocation7 + $0x178] sm:$0xff]  ;;  %v244_v19 = vld [vmem:[#allocation7 + $0x170] sm:$0xff] }
  0x50   :  { %152 = vmatpush1.msra.mxu0 %v85_v44  ;;  %296 = vmatprep.subr.mxu1 %v207_v56  ;;  %v243_v20 = vld [vmem:[#allocation7 + $0x168] sm:$0xff]  ;;  %v242_v21 = vld [vmem:[#allocation7 + $0x160] sm:$0xff]  ;;  %v241_v22 = vld [vmem:[#allocation7 + $0x158] sm:$0xff] }
  0x51   :  { %153 = vmatprep.subr.mxu0 %v84_v46  ;;  %297 = vmatpush1.msra.mxu1 %v206_v57  ;;  %v240_v23 = vld [vmem:[#allocation7 + $0x150] sm:$0xff]  ;;  %v239_v24 = vld [vmem:[#allocation7 + $0x148] sm:$0xff]  ;;  %v238_v25 = vld [vmem:[#allocation7 + $0x140] sm:$0xff] }
  0x52   :  { %154 = vmatpush1.msra.mxu0 %v83_v48  ;;  %298 = vmatprep.subr.mxu1 %v205_v58  ;;  %v237_v26 = vld [vmem:[#allocation7 + $0x138] sm:$0xff]  ;;  %v236_v27 = vld [vmem:[#allocation7 + $0x130] sm:$0xff]  ;;  %v235_v28 = vld [vmem:[#allocation7 + $0x128] sm:$0xff]  ;;  %v115_v58 = vlaneseq }
  0x53   :  { %155 = vmatprep.subr.mxu0 %v82_v50  ;;  %299 = vmatpush1.msra.mxu1 %v204_v59  ;;  %v234_v29 = vld [vmem:[#allocation7 + $0x120] sm:$0xff]  ;;  %v233_v30 = vld [vmem:[#allocation7 + $0x118] sm:$0xff]  ;;  %v232_v31 = vld [vmem:[#allocation7 + $0x110] sm:$0xff] }
  0x54   :  { %156 = vmatpush1.msra.mxu0 %v81_v52  ;;  %300 = vmatprep.subr.mxu1 %v203_v60  ;;  %v231_v32 = vld [vmem:[#allocation7 + $0x108] sm:$0xff]  ;;  %v230_v33 = vld [vmem:[#allocation7 + $0x100] sm:$0xff]  ;;  %v378_v34 = vld [vmem:[#allocation8 + $0xf8] sm:$0xff]  ;;  %v116_v59 = vshrl.u32 %v115_v58, 7 }
  0x55   :  { %190 = vmatmul.mubr.f32.vlgmr.msra.gmra.mxu0 %v80_v54  ;;  %301 = vmatpush1.msra.mxu1 %v202_v61  ;;  %v362_v35 = vld [vmem:[#allocation8 + $0x78] sm:$0xff]  ;;  %v377_v36 = vld [vmem:[#allocation8 + $0xf0] sm:$0xff]  ;;  %v376_v38 = vld [vmem:[#allocation8 + $0xe8] sm:$0xff] }
  0x56   :  { %302 = vmatprep.subr.mxu1 %v201_v62  ;;  %485 = vmatprep.subr.mxu0 %v378_v34  ;;  %v361_v37 = vld [vmem:[#allocation8 + $0x70] sm:$0xff]  ;;  %v360_v39 = vld [vmem:[#allocation8 + $0x68] sm:$0xff]  ;;  %v375_v40 = vld [vmem:[#allocation8 + $0xe0] sm:$0xff]  ;;  %v117_v60 = vsub.s32 0, %v116_v59  ;;  %v121_v62 = vsub.s32 1, %v116_v59 }
  0x57   :  { %303 = vmatpush1.msra.mxu1 %v200_v63  ;;  %486 = vmatpush3.msra.mxu0 %v362_v35  ;;  %v359_v41 = vld [vmem:[#allocation8 + $0x60] sm:$0xff]  ;;  %v374_v42 = vld [vmem:[#allocation8 + $0xd8] sm:$0xff]  ;;  %v373_v44 = vld [vmem:[#allocation8 + $0xd0] sm:$0xff] }
  0x58   :  { %304 = vmatprep.subr.mxu1 %v199_v0  ;;  %487 = vmatprep.subr.mxu0 %v377_v36  ;;  %v358_v43 = vld [vmem:[#allocation8 + $0x58] sm:$0xff]  ;;  %v357_v45 = vld [vmem:[#allocation8 + $0x50] sm:$0xff]  ;;  %v372_v46 = vld [vmem:[#allocation8 + $0xc8] sm:$0xff] }
  0x59   :  { %305 = vmatpush1.msra.mxu1 %v198_v1  ;;  %488 = vmatpush3.msra.mxu0 %v361_v37  ;;  %v356_v47 = vld [vmem:[#allocation8 + $0x48] sm:$0xff]  ;;  %v371_v48 = vld [vmem:[#allocation8 + $0xc0] sm:$0xff]  ;;  %v370_v50 = vld [vmem:[#allocation8 + $0xb8] sm:$0xff] }
  0x5a   :  { %306 = vmatprep.subr.mxu1 %v261_v2  ;;  %489 = vmatprep.subr.mxu0 %v376_v38  ;;  %v355_v49 = vld [vmem:[#allocation8 + $0x40] sm:$0xff]  ;;  %v354_v51 = vld [vmem:[#allocation8 + $0x38] sm:$0xff]  ;;  %v369_v52 = vld [vmem:[#allocation8 + $0xb0] sm:$0xff] }
  0x5b   :  { %307 = vmatpush2.msra.mxu1 %v260_v3  ;;  %490 = vmatpush3.msra.mxu0 %v360_v39  ;;  %v353_v53 = vld [vmem:[#allocation8 + $0x30] sm:$0xff]  ;;  %v368_v54 = vld [vmem:[#allocation8 + $0xa8] sm:$0xff]  ;;  %v367_v56 = vld [vmem:[#allocation8 + $0xa0] sm:$0xff] }
  0x5c   :  { %308 = vmatprep.subr.mxu1 %v259_v4  ;;  %491 = vmatprep.subr.mxu0 %v375_v40  ;;  %v352_v55 = vld [vmem:[#allocation8 + $0x28] sm:$0xff]  ;;  %v351_v57 = vld [vmem:[#allocation8 + $0x20] sm:$0xff]  ;;  %v113_v61 = vld [vmem:[%s718_s2] sm:$0x3] }
  0x5d   :  { %309 = vmatpush2.msra.mxu1 %v258_v5  ;;  %492 = vmatpush3.msra.mxu0 %v359_v41  ;;  %v118_v63 = vrot.slane %v113_v61, %v117_v60  ;;  %v122_v0 = vrot.slane %v113_v61, %v121_v62 }
  0x5e   :  { %310 = vmatprep.subr.mxu1 %v257_v6  ;;  %493 = vmatprep.subr.mxu0 %v374_v42 }
  0x5f   :  { %311 = vmatpush2.msra.mxu1 %v256_v7  ;;  %494 = vmatpush3.msra.mxu0 %v358_v43  ;;  %v366_v7 = vld [vmem:[#allocation8 + $0x98] sm:$0xff] }
  0x60   :  { %312 = vmatprep.subr.mxu1 %v255_v8  ;;  %495 = vmatprep.subr.mxu0 %v373_v44  ;;  %v350_v8 = vld [vmem:[#allocation8 + $0x18] sm:$0xff] }
  0x61   :  { %313 = vmatpush2.msra.mxu1 %v254_v9  ;;  %496 = vmatpush3.msra.mxu0 %v357_v45  ;;  %v365_v9 = vld [vmem:[#allocation8 + $0x90] sm:$0xff] }
  0x62   :  { %314 = vmatprep.subr.mxu1 %v253_v10  ;;  %497 = vmatprep.subr.mxu0 %v372_v46  ;;  %v349_v10 = vld [vmem:[#allocation8 + $0x10] sm:$0xff] }
  0x63   :  { %315 = vmatpush2.msra.mxu1 %v252_v11  ;;  %498 = vmatpush3.msra.mxu0 %v356_v47  ;;  %v364_v11 = vld [vmem:[#allocation8 + $0x88] sm:$0xff] }
  0x64   :  { %316 = vmatprep.subr.mxu1 %v251_v12  ;;  %499 = vmatprep.subr.mxu0 %v371_v48  ;;  %v348_v12 = vld [vmem:[#allocation8 + $0x8] sm:$0xff] }
  0x65   :  { %317 = vmatpush2.msra.mxu1 %v250_v13  ;;  %500 = vmatpush3.msra.mxu0 %v355_v49  ;;  %v363_v13 = vld [vmem:[#allocation8 + $0x80] sm:$0xff] }
  0x66   :  { %318 = vmatprep.subr.mxu1 %v249_v14  ;;  %501 = vmatprep.subr.mxu0 %v370_v50  ;;  %v347_v14 = vld [vmem:[#allocation8] sm:$0xff] }
  0x67   :  { %319 = vmatpush2.msra.mxu1 %v248_v15  ;;  %502 = vmatpush3.msra.mxu0 %v354_v51  ;;  %v262_v15 = vld [vmem:[%s720_s4] sm:$0x3]  ;;  %s651_s4 = smov [#allocation10]  }
  0x68   :  { %320 = vmatprep.subr.mxu1 %v247_v16  ;;  %503 = vmatprep.subr.mxu0 %v369_v52  ;;  %v267_v16 = vrot.slane %v262_v15, %v117_v60  ;;  %s473_s26 = sshll.u32 %s651_s4, 4  ;;  %s474_s26 = int_to_ptr.vmem [resolvable:$true] %s473_s26 }
  0x69   :  { %321 = vmatpush2.msra.mxu1 %v246_v17  ;;  %504 = vmatpush3.msra.mxu0 %v353_v53  ;;  %v271_v17 = vrot.slane %v262_v15, %v121_v62  ;;  %s614_s27 = scalar_lea.vmem %s474_s26, 128  ;;  %p619_p7 = scmp.lt.s32.totalorder %s474_s26, %s474_s26 }
  0x6a   :  { %322 = vmatprep.subr.mxu1 %v245_v18  ;;  %505 = vmatprep.subr.mxu0 %v368_v54  ;;  %p615_p6 = scmp.ne.s32.totalorder %s474_s26, %s614_s27  ;;  %p620_p8 = scmp.lt.s32.totalorder %s614_s27, %s614_s27 }
  0x6b   :  { %323 = vmatpush2.msra.mxu1 %v244_v19  ;;  %506 = vmatpush3.msra.mxu0 %v352_v55 }
  0x6c   :  { %324 = vmatprep.subr.mxu1 %v243_v20  ;;  %507 = vmatprep.subr.mxu0 %v367_v56  ;;  %p621_p9 = por %p620_p8, %p619_p7 }
  0x6d   :  { %325 = vmatpush2.msra.mxu1 %v242_v21  ;;  %508 = vmatpush3.msra.mxu0 %v351_v57 }
  0x6e   :  { %326 = vmatprep.subr.mxu1 %v241_v22  ;;  %509 = vmatprep.subr.mxu0 %v366_v7  ;;  %p622_p10 = pnand %p621_p9, %p615_p6 }
  0x6f   :  { %327 = vmatpush2.msra.mxu1 %v240_v23  ;;  %510 = vmatpush3.msra.mxu0 %v350_v8 }
  0x70   :  { %328 = vmatprep.subr.mxu1 %v239_v24  ;;  %511 = vmatprep.subr.mxu0 %v365_v9 }
  0x71   :  { %329 = vmatpush2.msra.mxu1 %v238_v25  ;;  %512 = vmatpush3.msra.mxu0 %v349_v10 }
  0x72   :  { %330 = vmatprep.subr.mxu1 %v237_v26  ;;  %513 = vmatprep.subr.mxu0 %v364_v11  ;;  %v484_v26 = vld [vmem:[%s722_s6] ss:$0 sm:$0xff] }
  0x73   :  { %331 = vmatpush2.msra.mxu1 %v236_v27  ;;  %514 = vmatpush3.msra.mxu0 %v348_v12 }
  0x74   :  { %332 = vmatprep.subr.mxu1 %v235_v28  ;;  %515 = vmatprep.subr.mxu0 %v363_v13 }
  0x75   :  { %333 = vmatpush2.msra.mxu1 %v234_v29  ;;  %516 = vmatpush3.msra.mxu0 %v347_v14 }
  0x76   :  { %334 = vmatprep.subr.mxu1 %v233_v30 }
  0x77   :  { %335 = vmatpush2.msra.mxu1 %v232_v31 }
  0x78   :  { %336 = vmatprep.subr.mxu1 %v231_v32 }
  0x79   :  { %337 = vmatpush2.msra.mxu1 %v230_v33 }
 0x115   :  { %v191_v1 = vpop.f32.mrf.mxu0 }
 0x116   :  { %v192_v2 = vadd.f32 %v191_v1, %v118_v63 }
 0x117   :  { %v193_v3 = vpop.f32.mrf.mxu0 }
 0x118   :  { %v194_v4 = vadd.f32 %v193_v3, %v122_v0  ;;  %v196_v6 = vmax.f32 %v192_v2, 0.0 }
 0x11a   :  { %v197_v5 = vmax.f32 %v194_v4, 0.0 }
 0x11c   :  { %338 = vmatprep.mubr.f32.mxu1 %v197_v5 }
 0x11d   :  { %339 = vmatmul.mubr.f32.vlgmr.msra.gmra.mxu1 %v196_v6 }
 0x1dd   :  { %v340_v18 = vpop.f32.mrf.mxu1 }
 0x1de   :  { %v341_v19 = vadd.f32 %v340_v18, %v267_v16 }
 0x1df   :  { %v342_v20 = vpop.f32.mrf.mxu1 }
 0x1e0   :  { %v343_v21 = vadd.f32 %v342_v20, %v271_v17  ;;  %v345_v23 = vmax.f32 %v341_v19, 0.0 }
 0x1e2   :  { %v346_v22 = vmax.f32 %v343_v21, 0.0 }
 0x1e4   :  { %450 = vmatprep.mubr.f32.mxu0 %v346_v22 }
 0x1e5   :  { %451 = vmatmul.mubr.f32.vlgmr.msra.gmra.mxu0 %v345_v23 }
 0x2a5   :  { %v517_v24 = vpop.f32.mrf.mxu0 }
 0x2a7   :  { %v518_v25 = vpop.f32.mrf.mxu0 }
 0x2a8   :  { %v519_v27 = vadd.f32 %v518_v25, %v517_v24 }
 0x2aa   :  { %v453_v28 = vadd.f32 %v519_v27, %v484_v26 }
 0x2ac   :  { %456 = vmax.xlane.f32.xlu0 %v453_v28 }
 0x335   :  { %v457_v29 = vpop.xlane.xlu0 %456 }
 0x336   :  { %v458_v30 = vsub.f32 %v453_v28, %v457_v29 }
 0x338   :  { %v459_v31 = vmul.f32 1.442695, %v458_v30 }
 0x33a   :  { %530 = vpow2.f32 %v459_v31 }
 0x347   :  { %v531_v32 = vpop.eup %530 }
 0x348   :  { %461 = vadd.xlane.f32.xlu0 %v531_v32 }
 0x3d1   :  { %v462_v33 = vpop.xlane.xlu0 %461 }
 0x3d2   :  { %532 = vlog2.f32 %v462_v33 }
 0x3df   :  { %v533_v34 = vpop.eup %532 }
 0x3e0   :  { %v464_v35 = vmul.f32 0.6931472, %v533_v34 }
 0x3e2   :  { %v465_v36 = vsub.f32 %v458_v30, %v464_v35 }
 0x3e4   :  { %466 = vst [vmem:[#allocation10] sm:$0xff] %v465_v36 }
 0x3e5   :  { %625 = shalt.err (!%p622_p10)
}
 0x3e6   :  { %476 = dma.vmem_to_hbm [thread:$0]  %s474_s26, 128, %s723_s7, [#allocation4]  }
 0x3e7   :  { %640 = dma.done.wait [#allocation4], 128  }
 0x3e8   :  { %641 = vsyncadd [#allocation4], 4294967168 }
 0x3e9   :  { %480 = vsyncpa [#allocation3], 1 }
 0x3ea   :  { %481 = vsyncpa [#allocation6], 1 }
 0x3eb   :  { %482 = vsyncpa [#allocation9], 1 }
 0x3ec   :  { %483 = vsyncpa [#allocation4], 1 }

</bundles_post_ra>
